<compile_context>
chip_gen: v6e
topology: v6e:2x2x1
jax: 0.10.0
libtpu: 0.0.40
codegen_flags: <defaults>
</compile_context>

<pallas_src>
import jax
import jax.numpy as jnp
from jax.experimental import pallas as pl
from jax.experimental.pallas import tpu as pltpu


def _round_up(n, m):
    return ((n + m - 1) // m) * m


def _tdd_kernel_mask(x_ref, w_ref, b_ref, m_ref, o_ref):
    # x_ref: (tile_rows, A)       input dtype (f32), downcast in-register
    # w_ref: (A, tile_n)          compute dtype (bf16)
    # b_ref: (1, tile_n)          f32
    # m_ref: (tile_rows, 1)       f32 (single lane column, broadcast in-register)
    # o_ref: (tile_rows, tile_n)  output dtype
    xc = x_ref[...].astype(w_ref.dtype)
    y = jnp.dot(xc, w_ref[...], preferred_element_type=jnp.float32)
    y = (y + b_ref[...]) * m_ref[...]
    o_ref[...] = y.astype(o_ref.dtype)


def _tdd_kernel_nomask(x_ref, w_ref, b_ref, o_ref):
    xc = x_ref[...].astype(w_ref.dtype)
    y = jnp.dot(xc, w_ref[...], preferred_element_type=jnp.float32)
    o_ref[...] = (y + b_ref[...]).astype(o_ref.dtype)


def _footprint_bytes(tile_rows, tile_n, A, x_bytes, o_bytes, c_bytes, have_mask):
    # Double-buffered tiles (conservative: count the weight twice even when resident).
    f = 2 * tile_rows * A * x_bytes          # x tiles
    f += 2 * A * tile_n * c_bytes            # weight tiles
    f += 2 * tile_n * 4                      # bias tiles
    f += 2 * tile_rows * tile_n * o_bytes    # out tiles
    if have_mask:
        f += 2 * tile_rows * 4               # mask tiles
    return f


def time_distributed_dense(x, mask, weight, bias, *,
                           out_dtype=None, compute_dtype=jnp.bfloat16):
    """
    x:      (batch, time, A)
    mask:   (batch, time) or None
    weight: (B, A)   (PyTorch nn.Linear convention)
    bias:   (B,)
    returns (batch, time, B) in out_dtype (default: x.dtype)
    """
    batch, time, A = x.shape
    B = weight.shape[0]
    rows = batch * time
    out_dtype = x.dtype if out_dtype is None else out_dtype

    x_bytes = jnp.dtype(x.dtype).itemsize
    o_bytes = jnp.dtype(out_dtype).itemsize
    c_bytes = jnp.dtype(compute_dtype).itemsize
    have_mask = mask is not None

    # Lane-dense output: pad B (weight / bias only -- both small, one-time cost).
    B_pad = _round_up(B, 128)
    w_t = weight.T.astype(compute_dtype)                      # (A, B) bf16
    bias_f = bias.astype(jnp.float32)
    if B_pad != B:
        w_t = jnp.pad(w_t, ((0, 0), (0, B_pad - B)))
        bias_f = jnp.pad(bias_f, (0, B_pad - B))
    b2 = bias_f.reshape(1, B_pad)

    x2 = x.reshape(rows, A)                                   # no cast, no pad
    if have_mask:
        m2 = mask.reshape(rows, 1).astype(jnp.float32)

    # Generation-aware VMEM budget (128 MiB v5e/v6e, 64 MiB per-TC v7x).
    try:
        vmem_cap = int(getattr(pltpu.get_tpu_info(), "vmem_capacity_bytes", 64 << 20))
    except Exception:
        vmem_cap = 64 << 20
    budget = min((vmem_cap * 3) // 4, 100 << 20)

    # Resident weight whenever its (double-buffered) slab takes at most half the budget.
    weight_bytes = A * B_pad * c_bytes
    resident = (2 * weight_bytes) <= (budget // 2)
    tile_n = B_pad if resident else min(512, B_pad)           # >=256 fills the v6e/v7x MXU

    # Large row tiles (multiple of 16), shrunk until the double-buffered footprint fits.
    tile_rows = min(1024, _round_up(rows, 16))
    while (_footprint_bytes(tile_rows, tile_n, A, x_bytes, o_bytes, c_bytes, have_mask)
           > budget and tile_rows > 16):
        tile_rows = max(16, _round_up(tile_rows // 2, 16))
    fp = _footprint_bytes(tile_rows, tile_n, A, x_bytes, o_bytes, c_bytes, have_mask)

    vmem_limit = int(min(max(budget, fp + (4 << 20)), max(vmem_cap - (8 << 20), 32 << 20)))

    num_row_tiles = pl.cdiv(rows, tile_rows)
    if resident:
        grid = (num_row_tiles,)
        dims = ("parallel",)
        x_spec = pl.BlockSpec((tile_rows, A), lambda i: (i, 0))
        w_spec = pl.BlockSpec((A, B_pad), lambda i: (0, 0))       # constant -> stays resident
        b_spec = pl.BlockSpec((1, B_pad), lambda i: (0, 0))
        m_spec = pl.BlockSpec((tile_rows, 1), lambda i: (i, 0))
        o_spec = pl.BlockSpec((tile_rows, B_pad), lambda i: (i, 0))
        weight_reads = 1
    else:
        grid = (num_row_tiles, pl.cdiv(B_pad, tile_n))
        dims = ("parallel", "parallel")
        x_spec = pl.BlockSpec((tile_rows, A), lambda i, j: (i, 0))
        w_spec = pl.BlockSpec((A, tile_n), lambda i, j: (0, j))
        b_spec = pl.BlockSpec((1, tile_n), lambda i, j: (0, j))
        m_spec = pl.BlockSpec((tile_rows, 1), lambda i, j: (i, 0))
        o_spec = pl.BlockSpec((tile_rows, tile_n), lambda i, j: (i, j))
        weight_reads = num_row_tiles

    in_specs = [x_spec, w_spec, b_spec] + ([m_spec] if have_mask else [])
    kernel = _tdd_kernel_mask if have_mask else _tdd_kernel_nomask
    operands = (x2, w_t, b2, m2) if have_mask else (x2, w_t, b2)

    cost = pl.CostEstimate(
        flops=2 * rows * A * B_pad,
        transcendentals=0,
        bytes_accessed=int(rows * A * x_bytes
                           + weight_reads * A * B_pad * c_bytes
                           + B_pad * 4
                           + (rows * 4 if have_mask else 0)
                           + rows * B_pad * o_bytes),
    )

    out_padded = pl.pallas_call(
        kernel,
        out_shape=jax.ShapeDtypeStruct((rows, B_pad), out_dtype),
        grid_spec=pltpu.PrefetchScalarGridSpec(
            num_scalar_prefetch=0,
            grid=grid,
            in_specs=in_specs,
            out_specs=o_spec,
        ),
        compiler_params=pltpu.CompilerParams(
            dimension_semantics=dims,
            vmem_limit_bytes=vmem_limit,
        ),
        cost_estimate=cost,
    )(*operands)

    return out_padded[:, :B].reshape(batch, time, B)


def reference(x, mask, weight, bias, compute_dtype=jnp.bfloat16):
    # Mirror the kernel's bf16 rounding of x / W; f32 accumulation + epilogue.
    xc = x.astype(compute_dtype).astype(jnp.float32)
    wc = weight.astype(compute_dtype).astype(jnp.float32)
    y = jnp.einsum("bta,oa->bto", xc, wc, preferred_element_type=jnp.float32) + bias
    if mask is not None:
        y = y * mask[..., None]
    return y


if __name__ == "__main__":
    batch, time, in_feat, out_feat = 2, 8, 32, 64

    key = jax.random.PRNGKey(0)
    kx, km, kw, kb = jax.random.split(key, 4)

    x = jax.random.normal(kx, (batch, time, in_feat), dtype=jnp.float32)
    mask = (jax.random.uniform(km, (batch, time)) > 0.3).astype(jnp.float32)

    # Deterministic synthetic nn.Linear(in_feat, out_feat) parameters.
    weight = jax.random.normal(kw, (out_feat, in_feat), dtype=jnp.float32) * 0.05
    bias = jax.random.normal(kb, (out_feat,), dtype=jnp.float32) * 0.05

    # Masked path.
    y = jax.block_until_ready(time_distributed_dense(x, mask, weight, bias))
    y_ref = reference(x, mask, weight, bias)
    assert y.shape == (batch, time, out_feat)
    assert jnp.allclose(y, y_ref, atol=2e-3, rtol=2e-3), "mismatch vs reference (mask)"

    # No-mask specialization.
    y2 = jax.block_until_ready(time_distributed_dense(x, None, weight, bias))
    y2_ref = reference(x, None, weight, bias)
    assert jnp.allclose(y2, y2_ref, atol=2e-3, rtol=2e-3), "mismatch vs reference (no mask)"

    print("KERNEL_OK")
</pallas_src>

<mosaic_0001>
module attributes {stable_mosaic.version = 11 : i64} {
  func.func @_tdd_kernel_mask(%arg0: i32, %arg1: memref<16x32xf32, #tpu.memory_space<vmem>>, %arg2: memref<32x128xbf16, #tpu.memory_space<vmem>>, %arg3: memref<1x128xf32, #tpu.memory_space<vmem>>, %arg4: memref<16x1xf32, #tpu.memory_space<vmem>>, %arg5: memref<16x128xf32, #tpu.memory_space<vmem>>) attributes {dimension_semantics = [#tpu.dimension_semantics<parallel>], iteration_bounds = array<i64: 1>, scalar_prefetch = 0 : i64, scratch_operands = 0 : i64, tpu.core_type = #tpu.core_type<tc>, window_params = [{transform_indices = @transform_0, window_bounds = array<i64: 16, 32>}, {pipeline_mode = #tpu.pipeline_mode<synchronous>, transform_indices = @transform_1, window_bounds = array<i64: 32, 128>}, {pipeline_mode = #tpu.pipeline_mode<synchronous>, transform_indices = @transform_2, window_bounds = array<i64: 1, 128>}, {transform_indices = @transform_3, window_bounds = array<i64: 16, 1>}, {transform_indices = @transform_4, window_bounds = array<i64: 16, 128>}]} {
    %c0 = arith.constant 0 : index
    %c0_0 = arith.constant 0 : index
    %0 = vector.load %arg1[%c0, %c0_0] : memref<16x32xf32, #tpu.memory_space<vmem>>, vector<16x32xf32>
    %1 = arith.truncf %0 : vector<16x32xf32> to vector<16x32xbf16>
    %c0_1 = arith.constant 0 : index
    %c0_2 = arith.constant 0 : index
    %2 = vector.load %arg2[%c0_1, %c0_2] : memref<32x128xbf16, #tpu.memory_space<vmem>>, vector<32x128xbf16>
    %cst = arith.constant dense<0.000000e+00> : vector<16x128xf32>
    %3 = tpu.matmul %1, %2, %cst {dimension_numbers = #tpu.dot_dimension_numbers<[1], [0], [0], [1], [0, 0, 1, 1], [], []>} : vector<16x32xbf16>, vector<32x128xbf16>, vector<16x128xf32> -> vector<16x128xf32>
    %c0_3 = arith.constant 0 : index
    %c0_4 = arith.constant 0 : index
    %4 = vector.load %arg3[%c0_3, %c0_4] : memref<1x128xf32, #tpu.memory_space<vmem>>, vector<1x128xf32>
    %5 = vector.broadcast %4 : vector<1x128xf32> to vector<16x128xf32>
    %6 = arith.addf %3, %5 : vector<16x128xf32>
    %c0_5 = arith.constant 0 : index
    %c0_6 = arith.constant 0 : index
    %7 = vector.load %arg4[%c0_5, %c0_6] : memref<16x1xf32, #tpu.memory_space<vmem>>, vector<16x1xf32>
    %8 = vector.broadcast %7 : vector<16x1xf32> to vector<16x128xf32>
    %9 = arith.mulf %6, %8 : vector<16x128xf32>
    %c0_7 = arith.constant 0 : index
    %c0_8 = arith.constant 0 : index
    %10 = vector.load %arg5[%c0_7, %c0_8] : memref<16x128xf32, #tpu.memory_space<vmem>>, vector<16x128xf32>
    tpu.vector_store %arg5[%c0_7, %c0_8], %9 {strides = array<i32>} : memref<16x128xf32, #tpu.memory_space<vmem>>, vector<16x128xf32>,
    return
  }
  func.func @transform_0(%arg0: i32) -> (i32, i32) {
    %c0_i32 = arith.constant 0 : i32
    %c0_i32_0 = arith.constant 0 : i32
    return %arg0, %c0_i32 : i32, i32
  }
  func.func @transform_1(%arg0: i32) -> (i32, i32) {
    %c0_i32 = arith.constant 0 : i32
    %c0_i32_0 = arith.constant 0 : i32
    %c0_i32_1 = arith.constant 0 : i32
    return %c0_i32, %c0_i32_0 : i32, i32
  }
  func.func @transform_2(%arg0: i32) -> (i32, i32) {
    %c0_i32 = arith.constant 0 : i32
    %c0_i32_0 = arith.constant 0 : i32
    %c0_i32_1 = arith.constant 0 : i32
    return %c0_i32, %c0_i32_0 : i32, i32
  }
  func.func @transform_3(%arg0: i32) -> (i32, i32) {
    %c0_i32 = arith.constant 0 : i32
    %c0_i32_0 = arith.constant 0 : i32
    return %arg0, %c0_i32 : i32, i32
  }
  func.func @transform_4(%arg0: i32) -> (i32, i32) {
    %c0_i32 = arith.constant 0 : i32
    %c0_i32_0 = arith.constant 0 : i32
    return %arg0, %c0_i32 : i32, i32
  }
}

</mosaic_0001>

<bundles_post_ra>
// kernel: tpu_custom_call.1
= control target key start
LH: loop header
LB: loop body
LE: loop exit
PB: predicated region body
PF: predicated region fallthrough
CT: control target
= control target key end

     0   :  { %9 = vsyncpa [#allocation3], 0  ;;  %s263_s0 = inlined_call_operand.vmem [shape: f32[16,32], index: 0, kind: input, shape index: {}]   ;;  %s264_s1 = inlined_call_operand.hbm [shape: bf16[32,128], index: 1, kind: input, shape index: {}]   ;;  %s265_s2 = inlined_call_operand.vmem [shape: f32[1,128], index: 2, kind: input, shape index: {}]   ;;  %s266_s3 = inlined_call_operand.vmem [shape: f32[16,1], index: 3, kind: input, shape index: {}]   ;;  %s267_s4 = inlined_call_operand.hbm [shape: f32[16,128], index: 4, kind: output, shape index: {}]  }
   0x1   :  { %10 = vsyncpa [#allocation4], 0  ;;  %s208_s15 = smov [#allocation2]  }
   0x2   :  { %s18_s16 = sshll.u32 %s208_s15, 4  ;;  %s19_s16 = int_to_ptr.vmem [resolvable:$true] %s18_s16 }
   0x3   :  { %s172_s17 = scalar_lea.vmem %s19_s16, 256  ;;  %p177_p1 = scmp.lt.s32.totalorder %s19_s16, %s19_s16 }
   0x4   :  { %p173_p0 = scmp.ne.s32.totalorder %s19_s16, %s172_s17  ;;  %p178_p2 = scmp.lt.s32.totalorder %s172_s17, %s172_s17 }
   0x6   :  { %p179_p3 = por %p178_p2, %p177_p1 }
   0x8   :  { %p180_p4 = pnand %p179_p3, %p173_p0 }
   0xa   :  { %183 = shalt.err (!%p180_p4)
}
   0xb   :  { %s209_s18 = smov 64   ;;  %s210_s19 = smov 4  }
   0xc   :  { %24 = dma.hbm_to_vmem [thread:$0]  %s264_s1, 256, %s19_s16, [#allocation3], %s209_s18, %s209_s18, %s210_s19  }
   0xd   :  { %204 = dma.done.wait [#allocation3], 256  }
   0xe   :  { %205 = vsyncadd [#allocation3], 4294967040  ;;  %v211_v0 = vmov 0.0   ;;  %vm212_vm0 = vmmov 0   ;;  %v213_v1 = vmov 0   ;;  %v162_v2 = vld [vmem:[#allocation2 + $0x8] sm:$0xff]  }
   0xf   :  { %144 = vmatprep.subr.bf16.mxu0 %v211_v0  ;;  %148 = vmatprep.mubr.msk.bf16.mxu0 %vm212_vm0, %v211_v0  ;;  %v163_v3 = vld [vmem:[#allocation2] sm:$0xff]   ;;  %v34_v5 = vld [vmem:[%s263_s0 + $0x8] sm:$0xff]  ;;  %vm59_vm1 = vcmask 261120  }
  0x10   :  { %161 = vset.pattern.permute.xlu0 %v213_v1  ;;  %145 = vmatpush3.bf16.msra.mxu0 %v162_v2  ;;  %v33_v4 = vld [vmem:[%s263_s0] sm:$0xff]  ;;  %v105_v7 = vld [vmem:[%s266_s3 + $0x8] sm:$0xff]  ;;  %s214_s0 = smov [#allocation5]  }
  0x11   :  { %v104_v6 = vld [vmem:[%s266_s3] sm:$0xff]  ;;  %146 = vmatprep.subr.bf16.mxu0 %v211_v0  ;;  %v35_v8 = vpack.c.bf16 %v34_v5, %v33_v4  ;;  %s125_s5 = sshll.u32 %s214_s0, 4  ;;  %s126_s5 = int_to_ptr.vmem [resolvable:$true] %s125_s5 }
  0x12   :  { %108 = vperm.xlu0 %161, %v104_v6   ;;  %v137_v9 = vld [vmem:[%s265_s2] ss:$0 sm:$0xff]  ;;  %s184_s3 = scalar_lea.vmem %s126_s5, 256  ;;  %p189_p6 = scmp.lt.s32.totalorder %s126_s5, %s126_s5 }
  0x13   :  { %p185_p5 = scmp.ne.s32.totalorder %s126_s5, %s184_s3  ;;  %p190_p7 = scmp.lt.s32.totalorder %s184_s3, %s184_s3 }
  0x14   :  { %147 = vmatpush3.bf16.msra.mxu0 %v163_v3 }
  0x15   :  { %p191_p8 = por %p190_p7, %p189_p6 }
  0x16   :  { %113 = vperm.xlu0 %161, %v105_v7  }
  0x17   :  { %149 = vmatmul.mubr.msk.bf16.vlgmr.msra.gmra.mxu0 %vm59_vm1, %v35_v8  ;;  %p192_p9 = pnand %p191_p8, %p185_p5 }
  0x8d   :  { %v109_v10 = vpop.permute.xlu0 %108 }
  0x91   :  { %v114_v17 = vpop.permute.xlu0 %113 }
  0xd7   :  { %v97_v11 = vpop.f32.mrf.mxu0 }
  0xd8   :  { %v98_v12 = vadd.f32 %v137_v9, %v97_v11 }
  0xd9   :  { %v150_v13 = vpop.f32.mrf.mxu0 }
  0xda   :  { %v116_v14 = vmul.f32 %v109_v10, %v98_v12 }
  0xdb   :  { %v100_v15 = vpop.f32.mrf.mxu0 }
  0xdc   :  { %118 = vst [vmem:[#allocation5] sm:$0xff] %v116_v14  ;;  %v101_v16 = vadd.f32 %v137_v9, %v100_v15 }
  0xdd   :  { %v151_v18 = vpop.f32.mrf.mxu0 }
  0xde   :  { %v117_v19 = vmul.f32 %v114_v17, %v101_v16 }
  0xe0   :  { %119 = vst [vmem:[#allocation5 + $0x8] sm:$0xff] %v117_v19 }
  0xe1   :  { %195 = shalt.err (!%p192_p9)
}
  0xe2   :  { %s215_s2 = smov 128   ;;  %s216_s6 = smov 8  }
  0xe3   :  { %131 = dma.vmem_to_hbm [thread:$0]  %s126_s5, 256, %s267_s4, [#allocation4], %s215_s2, %s215_s2, %s216_s6  }
  0xe4   :  { %206 = dma.done.wait [#allocation4], 256  }
  0xe5   :  { %207 = vsyncadd [#allocation4], 4294967040 }
  0xe6   :  { %135 = vsyncpa [#allocation3], 1 }
  0xe7   :  { %136 = vsyncpa [#allocation4], 1 }

</bundles_post_ra>
